<compile_context>
chip_gen: v5e
topology: v5e:2x2
jax: 0.10.0
libtpu: 0.0.40
codegen_flags: <defaults>
</compile_context>

<pallas_src>
import jax
import jax.numpy as jnp
from jax.experimental import pallas as pl
from jax.experimental.pallas import tpu as pltpu


_LANE = 128
_TARGET_BLOCK_BYTES = 4 * 1024 * 1024    # 4 MiB tile -> in+out double-buffered = 16 MiB
_VMEM_LIMIT_BYTES = 32 * 1024 * 1024     # safe headroom on v5e/v6e (128 MiB) and v7x (64 MiB)


def _identity_copy_kernel(x_ref, o_ref):
    # The whole "forward pass" of DummyBody: pass the tile through unchanged.
    o_ref[...] = x_ref[...]


def _sublane_packing(dtype):
    # f32 -> 8 rows, bf16 -> 16, int8/fp8 -> 32 (sub-32-bit dtypes pack along sublanes).
    itemsize = jnp.dtype(dtype).itemsize
    return 8 * max(1, 4 // itemsize)


def dummy_body_forward(x):
    """Identity forward of DummyBody via a (near zero-cost) Pallas TPU kernel."""
    orig_shape = x.shape
    total = x.size

    # --- lane-dense 2D view (free row-major bitcast in the wrapper) ----------
    if total % _LANE == 0:
        x2 = x.reshape(total // _LANE, _LANE)
    elif x.ndim >= 2:
        x2 = x.reshape(-1, orig_shape[-1])
    else:
        x2 = x.reshape(1, total)
    R, C = x2.shape

    # --- row-tile selection: single untiled block if it fits, else big tiles --
    itemsize = jnp.dtype(x2.dtype).itemsize
    bytes_per_row = C * itemsize
    packing = _sublane_packing(x2.dtype)
    max_rows = max(1, _TARGET_BLOCK_BYTES // bytes_per_row)
    if R <= max_rows:
        block_rows = R                                   # one block, grid of 1
    else:
        block_rows = max(packing, (max_rows // packing) * packing)
    num_blocks = pl.cdiv(R, block_rows)

    compiler_params = pltpu.CompilerParams(
        vmem_limit_bytes=_VMEM_LIMIT_BYTES,
        # >1 step: let megacore (v7x: 2 TCs) split the copy; 1 step: it's moot.
        dimension_semantics=("parallel",) if num_blocks > 1 else ("arbitrary",),
    )

    y2 = pl.pallas_call(
        _identity_copy_kernel,
        out_shape=jax.ShapeDtypeStruct((R, C), x2.dtype),
        grid=(num_blocks,),
        in_specs=[pl.BlockSpec((block_rows, C), lambda i: (i, 0))],
        out_specs=pl.BlockSpec((block_rows, C), lambda i: (i, 0)),
        # Zero-copy when the input buffer is donatable; otherwise XLA inserts
        # the single unavoidable copy (caller must not rely on distinct buffers).
        input_output_aliases={0: 0},
        compiler_params=compiler_params,
    )(x2)

    return y2.reshape(orig_shape)


if __name__ == "__main__":
    # DummyBody(state_dim) has no parameters; feature_dim == state_dim.
    batch, state_dim = 8, 32
    key = jax.random.PRNGKey(0)
    x = jax.random.normal(key, (batch, state_dim), dtype=jnp.float32)

    # Snapshot expected values before the (potentially aliasing/donating) call.
    expected = jax.device_get(x)

    y = dummy_body_forward(x)
    y = jax.block_until_ready(y)

    assert y.shape == (batch, state_dim) and y.dtype == jnp.float32
    assert bool(jnp.all(y == jnp.asarray(expected)))
    print("KERNEL_OK")
</pallas_src>

<mosaic_0001>
module attributes {stable_mosaic.version = 11 : i64} {
  func.func @_identity_copy_kernel(%arg0: i32, %arg1: memref<2x128xf32, #tpu.memory_space<vmem>>, %arg2: memref<2x128xf32, #tpu.memory_space<vmem>>) attributes {dimension_semantics = [#tpu.dimension_semantics<arbitrary>], iteration_bounds = array<i64: 1>, scalar_prefetch = 0 : i64, scratch_operands = 0 : i64, tpu.core_type = #tpu.core_type<tc>, window_params = [{transform_indices = @transform_0, window_bounds = array<i64: 2, 128>}, {transform_indices = @transform_1, window_bounds = array<i64: 2, 128>}]} {
    %c0 = arith.constant 0 : index
    %c0_0 = arith.constant 0 : index
    %0 = vector.load %arg1[%c0, %c0_0] : memref<2x128xf32, #tpu.memory_space<vmem>>, vector<2x128xf32>
    %c0_1 = arith.constant 0 : index
    %c0_2 = arith.constant 0 : index
    %1 = vector.load %arg2[%c0_1, %c0_2] : memref<2x128xf32, #tpu.memory_space<vmem>>, vector<2x128xf32>
    tpu.vector_store %arg2[%c0_1, %c0_2], %0 {strides = array<i32>} : memref<2x128xf32, #tpu.memory_space<vmem>>, vector<2x128xf32>,
    return
  }
  func.func @transform_0(%arg0: i32) -> (i32, i32) {
    %c0_i32 = arith.constant 0 : i32
    %c0_i32_0 = arith.constant 0 : i32
    return %arg0, %c0_i32 : i32, i32
  }
  func.func @transform_1(%arg0: i32) -> (i32, i32) {
    %c0_i32 = arith.constant 0 : i32
    %c0_i32_0 = arith.constant 0 : i32
    return %arg0, %c0_i32 : i32, i32
  }
}

</mosaic_0001>

<bundles_post_ra>
// kernel: tpu_custom_call.1
= control target key start
LH: loop header
LB: loop body
LE: loop exit
PB: predicated region body
PF: predicated region fallthrough
CT: control target
= control target key end

     0   :  { %6 = vsyncpa [#allocation3], 0  ;;  %s114_s0 = inlined_call_operand.hbm [shape: f32[2,128], index: 0, kind: input, shape index: {}, may-alias: {0,1}]   ;;  %s115_s1 = inlined_call_operand.hbm [shape: f32[2,128], index: 1, kind: output, shape index: {}, may-alias: {0,1}]  }
   0x1   :  { %7 = vsyncpa [#allocation4], 0  ;;  %s13_s8 = sshll.u32 %s114_s0, 4  ;;  %s96_s9 = smov [#allocation2]   ;;  %s14_s8 = int_to_ptr.hbm [resolvable:$true] %s13_s8 }
   0x2   :  { %s15_s10 = sshll.u32 %s96_s9, 4  ;;  %s16_s10 = int_to_ptr.vmem [resolvable:$true] %s15_s10 }
   0x3   :  { %18 = dma.hbm_to_vmem [thread:$0]  %s14_s8, 32, %s16_s10, [#allocation3]  }
   0x4   :  { %92 = dma.done.wait [#allocation3], 32  }
   0x5   :  { %93 = vsyncadd [#allocation3], 4294967264  ;;  %s97_s11 = smov [#allocation5]   ;;  %s32_s15 = sshll.u32 %s115_s1, 4  ;;  %v23_v0 = vld [vmem:[#allocation2] sm:$0x3]  ;;  %s33_s15 = int_to_ptr.hbm [resolvable:$true] %s32_s15 }
   0x6   :  { %s30_s12 = sshll.u32 %s97_s11, 4  ;;  %24 = vst [vmem:[#allocation5] sm:$0x3] %v23_v0  ;;  %s31_s12 = int_to_ptr.vmem [resolvable:$true] %s30_s12 }
   0x7   :  { %35 = dma.vmem_to_hbm [thread:$0]  %s31_s12, 32, %s33_s15, [#allocation4]  }
   0x8   :  { %94 = dma.done.wait [#allocation4], 32  }
   0x9   :  { %95 = vsyncadd [#allocation4], 4294967264 }
   0xa   :  { %40 = vsyncpa [#allocation3], 1 }
   0xb   :  { %41 = vsyncpa [#allocation4], 1 }

</bundles_post_ra>
